<compile_context>
chip_gen: v6e
topology: v6e:2x2x1
jax: 0.10.0
libtpu: 0.0.40
codegen_flags: <defaults>
</compile_context>

<pallas_src>
import jax
import jax.numpy as jnp
from jax.experimental import pallas as pl
from jax.experimental.pallas import tpu as pltpu


# ---------------------------------------------------------------------------
# Kernel
# ---------------------------------------------------------------------------

def lstm_cell_kernel(xh_ref, c0_ref, w_ref, b_ref, hc_ref):
    """One batch-tile of the LSTMCell forward.

    xh_ref : (Bt, E+H)  bf16   -- [x | h0]
    c0_ref : (Bt, H)    f32
    w_ref  : (E+H, 4H)  bf16   -- packed [Wx ; Wh], gate order i,f,o,g
    b_ref  : (1, 4H)    f32    -- pre-summed input+hidden biases
    hc_ref : (Bt, 2H)   f32    -- [h1 | c1]
    """
    H = c0_ref.shape[1]

    # Single fused MXU matmul over the full K = E + H contraction, f32 acc.
    gates = jnp.dot(xh_ref[...], w_ref[...],
                    preferred_element_type=jnp.float32) + b_ref[...]

    i = jax.nn.sigmoid(gates[:, 0 * H:1 * H])
    f = jax.nn.sigmoid(gates[:, 1 * H:2 * H])
    o = jax.nn.sigmoid(gates[:, 2 * H:3 * H])
    g = jnp.tanh(gates[:, 3 * H:4 * H])

    c1 = f * c0_ref[...] + i * g
    h1 = o * jnp.tanh(c1)

    # One contiguous lane-dense (Bt, 2H) store stream.
    hc_ref[...] = jnp.concatenate([h1, c1], axis=1).astype(hc_ref.dtype)


# ---------------------------------------------------------------------------
# Wrapper
# ---------------------------------------------------------------------------

def _round_up(x, m):
    return ((x + m - 1) // m) * m


def lstm_cell(x, h0, c0, w_packed, b_packed, *, b_tile=None,
              transfer_dtype=jnp.bfloat16):
    """Pallas LSTMCell forward.  Returns (h1, c1) in f32."""
    B, E = x.shape
    H = h0.shape[1]
    assert w_packed.shape == (E + H, 4 * H)

    # Batch tile: at most 512 rows per step, at least 2 grid steps when B
    # allows (v7x megacore), always a multiple of 8 (sublane alignment).
    if b_tile is None:
        b_tile = max(8, min(512, _round_up(B, 16) // 2))
    b_tile = _round_up(b_tile, 8)
    B_pad = _round_up(B, b_tile)
    grid = B_pad // b_tile

    # Pack + cast operands (bf16 transfer, f32 accumulate in-kernel).
    xh = jnp.concatenate([x, h0], axis=1).astype(transfer_dtype)
    w = w_packed.astype(transfer_dtype)
    b = b_packed.astype(jnp.float32).reshape(1, 4 * H)
    c0f = c0.astype(jnp.float32)
    if B_pad != B:
        pad = B_pad - B
        xh = jnp.pad(xh, ((0, pad), (0, 0)))
        c0f = jnp.pad(c0f, ((0, pad), (0, 0)))

    flops = 2 * B_pad * (E + H) * 4 * H + 10 * B_pad * H
    transcendentals = 5 * B_pad * H                       # 3 sigmoid + 2 tanh
    bytes_accessed = (2 * (B_pad * (E + H) + (E + H) * 4 * H)      # bf16 xh, W
                      + 4 * (B_pad * H + 4 * H + B_pad * 2 * H))   # f32 c0,b,out

    hc = pl.pallas_call(
        lstm_cell_kernel,
        out_shape=jax.ShapeDtypeStruct((B_pad, 2 * H), jnp.float32),
        grid_spec=pltpu.PrefetchScalarGridSpec(
            num_scalar_prefetch=0,
            grid=(grid,),
            in_specs=[
                pl.BlockSpec((b_tile, E + H), lambda i: (i, 0)),   # [x | h0]
                pl.BlockSpec((b_tile, H), lambda i: (i, 0)),       # c0
                pl.BlockSpec((E + H, 4 * H), lambda i: (0, 0)),    # packed W (resident)
                pl.BlockSpec((1, 4 * H), lambda i: (0, 0)),        # packed bias (resident)
            ],
            out_specs=pl.BlockSpec((b_tile, 2 * H), lambda i: (i, 0)),
        ),
        compiler_params=pltpu.CompilerParams(
            dimension_semantics=("parallel",),
            vmem_limit_bytes=64 * 1024 * 1024,
        ),
        cost_estimate=pl.CostEstimate(flops=flops,
                                      transcendentals=transcendentals,
                                      bytes_accessed=bytes_accessed),
    )(xh, c0f, w, b)

    h1 = hc[:B, :H]
    c1 = hc[:B, H:2 * H]
    return h1, c1


# ---------------------------------------------------------------------------
# Parameter handling (PyTorch layout -> packed kernel layout) + reference.
# ---------------------------------------------------------------------------

def init_params(key, E, H):
    """PyTorch-default-init Linear params, stored PyTorch-style (out, in)."""
    names = ["ii", "fi", "oi", "gi", "ih", "fh", "oh", "gh"]
    fan_ins = [E, E, E, E, H, H, H, H]
    keys = jax.random.split(key, 2 * len(names))
    params = {}
    for idx, (name, fan_in) in enumerate(zip(names, fan_ins)):
        lim = 1.0 / (fan_in ** 0.5)
        params["w_" + name] = jax.random.uniform(
            keys[2 * idx], (H, fan_in), jnp.float32, -lim, lim)
        params["b_" + name] = jax.random.uniform(
            keys[2 * idx + 1], (H,), jnp.float32, -lim, lim)
    return params


def pack_params(p):
    """Pack the 8 (out,in) Linears into one (E+H,4H) weight + (1,4H) bias."""
    wx = jnp.concatenate(
        [p["w_ii"].T, p["w_fi"].T, p["w_oi"].T, p["w_gi"].T], axis=1)   # (E,4H)
    wh = jnp.concatenate(
        [p["w_ih"].T, p["w_fh"].T, p["w_oh"].T, p["w_gh"].T], axis=1)   # (H,4H)
    w = jnp.concatenate([wx, wh], axis=0)                               # (E+H,4H)
    b = jnp.concatenate(
        [p["b_ii"] + p["b_ih"], p["b_fi"] + p["b_fh"],
         p["b_oi"] + p["b_oh"], p["b_gi"] + p["b_gh"]]).reshape(1, -1)  # (1,4H)
    return w, b


def lstm_cell_ref(x, h0, c0, p):
    """Pure-JAX transcription of LSTMCellModel.forward for validation."""
    lin = lambda v, w, b: v @ w.T + b
    i = jax.nn.sigmoid(lin(x, p["w_ii"], p["b_ii"]) + lin(h0, p["w_ih"], p["b_ih"]))
    f = jax.nn.sigmoid(lin(x, p["w_fi"], p["b_fi"]) + lin(h0, p["w_fh"], p["b_fh"]))
    o = jax.nn.sigmoid(lin(x, p["w_oi"], p["b_oi"]) + lin(h0, p["w_oh"], p["b_oh"]))
    g = jnp.tanh(lin(x, p["w_gi"], p["b_gi"]) + lin(h0, p["w_gh"], p["b_gh"]))
    c1 = f * c0 + i * g
    h1 = o * jnp.tanh(c1)
    return h1, c1


if __name__ == "__main__":
    # MXU/lane-friendly small shapes: E = H = 128 (full lane tiles), batch 256
    # -> two 128-row grid steps (pipelined; parallel across v7x cores).
    B, E, H = 256, 128, 128

    key = jax.random.PRNGKey(0)
    kp, kx, kh, kc = jax.random.split(key, 4)
    params = init_params(kp, E, H)
    w_packed, b_packed = pack_params(params)

    x = jax.random.normal(kx, (B, E), jnp.float32)
    h0 = jax.random.normal(kh, (B, H), jnp.float32)
    c0 = jax.random.normal(kc, (B, H), jnp.float32)

    h1, c1 = lstm_cell(x, h0, c0, w_packed, b_packed)
    h1 = jax.block_until_ready(h1)
    c1 = jax.block_until_ready(c1)

    h1_ref, c1_ref = lstm_cell_ref(x, h0, c0, params)
    h1_ref = jax.block_until_ready(h1_ref)
    c1_ref = jax.block_until_ready(c1_ref)

    # bf16 activation/weight transfer => relaxed tolerance vs f32 reference.
    assert jnp.allclose(h1, h1_ref, atol=3e-2, rtol=3e-2), \
        float(jnp.max(jnp.abs(h1 - h1_ref)))
    assert jnp.allclose(c1, c1_ref, atol=3e-2, rtol=3e-2), \
        float(jnp.max(jnp.abs(c1 - c1_ref)))
    print("KERNEL_OK")
</pallas_src>

<mosaic_0001>
module attributes {stable_mosaic.version = 11 : i64} {
  func.func @lstm_cell_kernel(%arg0: i32, %arg1: memref<128x256xbf16, #tpu.memory_space<vmem>>, %arg2: memref<128x128xf32, #tpu.memory_space<vmem>>, %arg3: memref<256x512xbf16, #tpu.memory_space<vmem>>, %arg4: memref<1x512xf32, #tpu.memory_space<vmem>>, %arg5: memref<128x256xf32, #tpu.memory_space<vmem>>) attributes {dimension_semantics = [#tpu.dimension_semantics<parallel>], iteration_bounds = array<i64: 2>, scalar_prefetch = 0 : i64, scratch_operands = 0 : i64, tpu.core_type = #tpu.core_type<tc>, window_params = [{transform_indices = @transform_0, window_bounds = array<i64: 128, 256>}, {transform_indices = @transform_1, window_bounds = array<i64: 128, 128>}, {pipeline_mode = #tpu.pipeline_mode<synchronous>, transform_indices = @transform_2, window_bounds = array<i64: 256, 512>}, {pipeline_mode = #tpu.pipeline_mode<synchronous>, transform_indices = @transform_3, window_bounds = array<i64: 1, 512>}, {transform_indices = @transform_4, window_bounds = array<i64: 128, 256>}]} {
    %c0 = arith.constant 0 : index
    %c0_0 = arith.constant 0 : index
    %0 = vector.load %arg1[%c0, %c0_0] : memref<128x256xbf16, #tpu.memory_space<vmem>>, vector<128x256xbf16>
    %c0_1 = arith.constant 0 : index
    %c0_2 = arith.constant 0 : index
    %1 = vector.load %arg3[%c0_1, %c0_2] : memref<256x512xbf16, #tpu.memory_space<vmem>>, vector<256x512xbf16>
    %cst = arith.constant dense<0.000000e+00> : vector<128x512xf32>
    %2 = tpu.matmul %0, %1, %cst {dimension_numbers = #tpu.dot_dimension_numbers<[1], [0], [0], [1], [0, 0, 1, 1], [], []>} : vector<128x256xbf16>, vector<256x512xbf16>, vector<128x512xf32> -> vector<128x512xf32>
    %c0_3 = arith.constant 0 : index
    %c0_4 = arith.constant 0 : index
    %3 = vector.load %arg4[%c0_3, %c0_4] : memref<1x512xf32, #tpu.memory_space<vmem>>, vector<1x512xf32>
    %4 = vector.broadcast %3 : vector<1x512xf32> to vector<128x512xf32>
    %5 = arith.addf %2, %4 : vector<128x512xf32>
    %6 = vector.extract_strided_slice %5 {offsets = [0, 0], sizes = [128, 128], strides = [1, 1]} : vector<128x512xf32> to vector<128x128xf32>
    %7 = arith.negf %6 : vector<128x128xf32>
    %8 = math.exp %7 : vector<128x128xf32>
    %cst_5 = arith.constant 1.000000e+00 : f32
    %9 = vector.broadcast %cst_5 : f32 to vector<128x128xf32>
    %10 = arith.addf %9, %8 : vector<128x128xf32>
    %11 = arith.divf %9, %10 : vector<128x128xf32>
    %12 = vector.extract_strided_slice %5 {offsets = [0, 128], sizes = [128, 128], strides = [1, 1]} : vector<128x512xf32> to vector<128x128xf32>
    %13 = arith.negf %12 : vector<128x128xf32>
    %14 = math.exp %13 : vector<128x128xf32>
    %cst_6 = arith.constant 1.000000e+00 : f32
    %15 = vector.broadcast %cst_6 : f32 to vector<128x128xf32>
    %16 = arith.addf %15, %14 : vector<128x128xf32>
    %17 = arith.divf %15, %16 : vector<128x128xf32>
    %18 = vector.extract_strided_slice %5 {offsets = [0, 256], sizes = [128, 128], strides = [1, 1]} : vector<128x512xf32> to vector<128x128xf32>
    %19 = arith.negf %18 : vector<128x128xf32>
    %20 = math.exp %19 : vector<128x128xf32>
    %cst_7 = arith.constant 1.000000e+00 : f32
    %21 = vector.broadcast %cst_7 : f32 to vector<128x128xf32>
    %22 = arith.addf %21, %20 : vector<128x128xf32>
    %23 = arith.divf %21, %22 : vector<128x128xf32>
    %24 = vector.extract_strided_slice %5 {offsets = [0, 384], sizes = [128, 128], strides = [1, 1]} : vector<128x512xf32> to vector<128x128xf32>
    %25 = math.tanh %24 : vector<128x128xf32>
    %c0_8 = arith.constant 0 : index
    %c0_9 = arith.constant 0 : index
    %26 = vector.load %arg2[%c0_8, %c0_9] : memref<128x128xf32, #tpu.memory_space<vmem>>, vector<128x128xf32>
    %27 = arith.mulf %17, %26 : vector<128x128xf32>
    %28 = arith.mulf %11, %25 : vector<128x128xf32>
    %29 = arith.addf %27, %28 : vector<128x128xf32>
    %30 = math.tanh %29 : vector<128x128xf32>
    %31 = arith.mulf %23, %30 : vector<128x128xf32>
    %32 = tpu.concatenate %31, %29 in 1 : vector<128x128xf32>, vector<128x128xf32> -> vector<128x256xf32>
    %c0_10 = arith.constant 0 : index
    %c0_11 = arith.constant 0 : index
    %33 = vector.load %arg5[%c0_10, %c0_11] : memref<128x256xf32, #tpu.memory_space<vmem>>, vector<128x256xf32>
    tpu.vector_store %arg5[%c0_10, %c0_11], %32 {strides = array<i32>} : memref<128x256xf32, #tpu.memory_space<vmem>>, vector<128x256xf32>,
    return
  }
  func.func @transform_0(%arg0: i32) -> (i32, i32) {
    %c0_i32 = arith.constant 0 : i32
    %c0_i32_0 = arith.constant 0 : i32
    return %arg0, %c0_i32 : i32, i32
  }
  func.func @transform_1(%arg0: i32) -> (i32, i32) {
    %c0_i32 = arith.constant 0 : i32
    %c0_i32_0 = arith.constant 0 : i32
    return %arg0, %c0_i32 : i32, i32
  }
  func.func @transform_2(%arg0: i32) -> (i32, i32) {
    %c0_i32 = arith.constant 0 : i32
    %c0_i32_0 = arith.constant 0 : i32
    %c0_i32_1 = arith.constant 0 : i32
    return %c0_i32, %c0_i32_0 : i32, i32
  }
  func.func @transform_3(%arg0: i32) -> (i32, i32) {
    %c0_i32 = arith.constant 0 : i32
    %c0_i32_0 = arith.constant 0 : i32
    %c0_i32_1 = arith.constant 0 : i32
    return %c0_i32, %c0_i32_0 : i32, i32
  }
  func.func @transform_4(%arg0: i32) -> (i32, i32) {
    %c0_i32 = arith.constant 0 : i32
    %c0_i32_0 = arith.constant 0 : i32
    return %arg0, %c0_i32 : i32, i32
  }
}

</mosaic_0001>

<bundles_post_ra>
// kernel: tpu_custom_call.1
= control target key start
LH: loop header
LB: loop body
LE: loop exit
PB: predicated region body
PF: predicated region fallthrough
CT: control target
= control target key end

     0   :  { %s2786_s0 = inlined_call_operand.hbm [shape: bf16[256,256], index: 0, kind: input, shape index: {}]   ;;  %s2787_s1 = inlined_call_operand.hbm [shape: f32[256,128], index: 1, kind: input, shape index: {}]   ;;  %s2788_s2 = inlined_call_operand.hbm [shape: bf16[256,512], index: 2, kind: input, shape index: {}]   ;;  %s2789_s3 = inlined_call_operand.vmem [shape: f32[1,512], index: 3, kind: input, shape index: {}]   ;;  %s2790_s4 = inlined_call_operand.hbm [shape: f32[256,256], index: 4, kind: output, shape index: {}]  }
   0x1   :  { %2794 = sst [smem:[#allocation13_spill]] %s2786_s0 }
   0x2   :  { %9 = vsyncpa [#allocation3], 0 }
   0x3   :  { %11 = vsyncpa [#allocation3 + $0x1], 0 }
   0x4   :  { %12 = vsyncpa [#allocation6], 0 }
   0x5   :  { %14 = vsyncpa [#allocation6 + $0x1], 0 }
   0x6   :  { %15 = vsyncpa [#allocation4], 0 }
   0x7   :  { %17 = vsyncpa [#allocation4 + $0x1], 0  ;;  %s2344_s15 = smov 0   ;;  %s2346_s16 = smov 0  }
   0x8   :  { %s2348_s17 = smov 0   ;;  %s2350_s18 = smov 0  }
   0x9 LB: > { %s2365_s19 = sadd.s32 4294967295, %s2307_s18   ;;  %s1554_s20 = sadd.s32 4294967294, %s2307_s18   ;;  %s2307_s18 = sphi %s2350_s18, %s2812_s18   ;;  %s2303_s17 = sphi %s2348_s17, %s2811_s17   ;;  %s2299_s16 = sphi %s2346_s16, %s2810_s16   ;;  %s2295_s15 = sphi %s2344_s15, %s2809_s15  }
   0xa   : > { %p43_p0 = scmp.ne.s32.totalorder %s2299_s16, %s2295_s15  ;;  %p2791_p1 = scmp.eq.s32.totalorder %s2365_s19, 0 }
   0xb   : > { %p141_p3 = scmp.eq.s32.totalorder %s1554_s20, 1  ;;  %p1555_p5 = scmp.ge.s32.totalorder %s2307_s18, 1 }
   0xc   : > { %p2374_p4 = por %p2791_p1, %p43_p0  ;;  %p148_p7 = scmp.lt.s32.totalorder %s2307_s18, 3 }
   0xd   : > { %p2379_p6 = por %p141_p3, %p43_p0  ;;  %s2309_s24 = smov [#allocation7]  }
   0xe   : > { %s2795_s21 = scalar_select %p2374_p4, 1, 0 }
   0xf   : > { %s2796_s22 = scalar_select %p2379_p6, 1, 0 }
  0x10   : > { %p2384_p8 = pnand %p1555_p5, %p148_p7  ;;  %s160_s25 = sshll.u32 %s2309_s24, 4  ;;  %s161_s25 = int_to_ptr.vmem [resolvable:$true] %s160_s25 }
  0x11   : > { %s2398_s27 = sadd.s32 1, %s2307_s18   ;;  %s30_s28 = sadd.s32 1, %s2303_s17 }
  0x12   : > { %p1719_p9 = pneg %p2384_p8  ;;  %s27_s29 = ssub.s32 %s2307_s18, %s2398_s27 }
  0x13   : > { %s2164_s30 = scalar_lea.vmem %s161_s25, 8192  ;;  %p2172_p5 = scmp.lt.s32.totalorder %s161_s25, %s161_s25 }
  0x14   : > { %p2393_p11 = pnand %p1719_p9, %p2791_p1  ;;  %p2165_p13 = scmp.ne.s32.totalorder %s161_s25, %s2164_s30 }
  0x15   : > { %p2173_p7 = scmp.lt.s32.totalorder %s2164_s30, %s2164_s30 }
  0x16   : > { %p2155_p12 = pneg %p2393_p11 }
  0x17   : > { %p2174_p10 = por %p2173_p7, %p2172_p5 }
  0x18   : > { %p2167_p0 = pnand %p2165_p13, %p2155_p12 }
  0x1a   : > { %p2168_p3 = pneg %p2167_p0 }
  0x1c   : > { %p2175_p2 = pnand %p2174_p10, %p2168_p3 }
  0x1e   : > { %2178 = shalt.err (!%p2175_p2)
}
  0x1f   : > { %s2310_s5 = smov 256   ;;  %s2311_s6 = smov 16  }
  0x20   : > { %1722 = dma.hbm_to_vmem [thread:$0]  (!%p2393_p11), %s2788_s2, 8192, %s161_s25, [#allocation6], %s2310_s5, %s2310_s5, %s2311_s6  }
  0x21   : > { %p28_p9 = scmp.eq.s32.totalorder %s27_s29, 0  ;;  %p37_p10 = scmp.ne.s32.totalorder %s2303_s17, %s2299_s16 }
  0x22   : > { %p38_p2 = scmp.eq.s32.totalorder %s2307_s18, 0  ;;  %p1735_p12 = scmp.lt.s32.totalorder %s2307_s18, 2 }
  0x23   : > { %s2415_s9 = scalar_select %p28_p9, %s2303_s17, %s30_s28  }
  0x24   : > { %p39_p13 = por %p38_p2, %p37_p10  ;;  %p2799_p0 = scmp.eq.s32.totalorder %s2365_s19, 1 }
  0x25   : > { %s177_s11 = sand.u32 1, %s2303_s17   ;;  %s1705_s12 = sshll.u32 %s2307_s18, 11 }
  0x26   : > { %p2419_p3 = por %p2799_p0, %p37_p10  ;;  %s2425_s13 = sshll.u32 %s177_s11, 7 }
  0x27   : > { %s2801_s0 = sld [smem:[#allocation13_spill]]  ;;  %s181_s25 = scalar_lea.vmem [#allocation2], %s2425_s13 }
  0x28   : > { %s2800_s10 = scalar_select %p2419_p3, 1, 0 }
  0x29   : > { %s189_s26 = sshll.u32 %s181_s25, 4  ;;  %p2435_p11 = pnand %p1735_p12, %p39_p13  ;;  %s2439_s26 = int_to_ptr.vmem [resolvable:$true] %s189_s26 }
  0x2a   : > { %s2441_s29 = scalar_lea.sflag [#allocation3], %s177_s11 }
  0x2b   : > { %p2181_p7 = pneg %p2435_p11 }
  0x2d   : > { %s2432_s24 = scalar_lea.hbm %s2801_s0, %s1705_s12  ;;  %s2184_s7 = scalar_lea.hbm %s2801_s0, 4096 }
  0x2e   : > { %s2179_s30 = scalar_lea.hbm %s2432_s24, 2048  ;;  %p2185_p2 = scmp.lt.s32.totalorder %s2432_s24, %s2801_s0 }
  0x2f   : > { %p2180_p5 = scmp.ne.s32.totalorder %s2432_s24, %s2179_s30  ;;  %p2186_p12 = scmp.lt.s32.totalorder %s2184_s7, %s2179_s30 }
  0x31   : > { %p2182_p9 = pnand %p2181_p7, %p2180_p5  ;;  %p2187_p13 = por %p2186_p12, %p2185_p2 }
  0x33   : > { %p2183_p10 = pneg %p2182_p9 }
  0x35   : > { %p2188_p0 = pnand %p2187_p13, %p2183_p10 }
  0x37   : > { %2191 = shalt.err (!%p2188_p0)
}
  0x38   : > { %s2192_s11 = scalar_lea.vmem %s2439_s26, 2048  ;;  %s2312_s20 = smov [#allocation2]  }
  0x39   : > { %p2193_p1 = scmp.ne.s32.totalorder %s2439_s26, %s2192_s11  ;;  %s2197_s25 = sshll.u32 %s2312_s20, 4  ;;  %s2198_s25 = int_to_ptr.vmem [resolvable:$false] %s2197_s25 }
  0x3a   : > { %s2199_s5 = scalar_lea.vmem %s2198_s25, 4096  ;;  %p2200_p6 = scmp.lt.s32.totalorder %s2439_s26, %s2198_s25 }
  0x3b   : > { %p2195_p5 = pnand %p2193_p1, %p2181_p7  ;;  %p2201_p3 = scmp.lt.s32.totalorder %s2199_s5, %s2192_s11 }
  0x3d   : > { %p2196_p9 = pneg %p2195_p5  ;;  %p2202_p4 = por %p2201_p3, %p2200_p6 }
  0x3f   : > { %p2203_p2 = pnand %p2202_p4, %p2196_p9 }
  0x41   : > { %2206 = shalt.err (!%p2203_p2)
}
  0x42   : > { %s2313_s30 = smov 128   ;;  %s2314_s6 = smov 8  }
  0x43   : > { %1726 = dma.hbm_to_vmem [thread:$0]  (!%p2435_p11), %s2432_s24, 2048, %s2439_s26, %s2441_s29, %s2313_s30, %s2313_s30, %s2314_s6  }
  0x44   : > { %s2476_s14 = scalar_lea.hbm %s2787_s1, %s1705_s12  ;;  %s203_s11 = scalar_lea.vmem [#allocation5], %s2425_s13 }
  0x45   : > { %s210_s20 = sshll.u32 %s203_s11, 4  ;;  %s199_s25 = sand.u32 1, %s2307_s18   ;;  %s2480_s20 = int_to_ptr.vmem [resolvable:$true] %s210_s20 }
  0x46   : > { %s200_s5 = scalar_lea.sflag [#allocation6], %s199_s25  ;;  %s2207_s0 = scalar_lea.hbm %s2476_s14, 2048 }
  0x47   : > { %p2208_p1 = scmp.ne.s32.totalorder %s2476_s14, %s2207_s0  ;;  %s2212_s12 = scalar_lea.hbm %s2787_s1, 4096 }
  0x48   : > { %p2213_p3 = scmp.lt.s32.totalorder %s2476_s14, %s2787_s1  ;;  %p2214_p10 = scmp.lt.s32.totalorder %s2212_s12, %s2207_s0 }
  0x49   : > { %p2210_p4 = pnand %p2208_p1, %p2181_p7 }
  0x4a   : > { %p2215_p12 = por %p2214_p10, %p2213_p3 }
  0x4b   : > { %p2211_p6 = pneg %p2210_p4 }
  0x4d   : > { %p2216_p13 = pnand %p2215_p12, %p2211_p6 }
  0x4f   : > { %2219 = shalt.err (!%p2216_p13)
}
  0x50   : > { %s2220_s13 = scalar_lea.vmem %s2480_s20, 2048  ;;  %s2315_s8 = smov [#allocation5]  }
  0x51   : > { %p2221_p0 = scmp.ne.s32.totalorder %s2480_s20, %s2220_s13  ;;  %s2225_s11 = sshll.u32 %s2315_s8, 4  ;;  %s2226_s11 = int_to_ptr.vmem [resolvable:$false] %s2225_s11 }
  0x52   : > { %s2227_s25 = scalar_lea.vmem %s2226_s11, 4096  ;;  %p2228_p2 = scmp.lt.s32.totalorder %s2480_s20, %s2226_s11 }
  0x53   : > { %p2223_p5 = pnand %p2221_p0, %p2181_p7  ;;  %p2229_p1 = scmp.lt.s32.totalorder %s2227_s25, %s2220_s13 }
  0x55   : > { %p2224_p9 = pneg %p2223_p5  ;;  %p2230_p4 = por %p2229_p1, %p2228_p2 }
  0x57   : > { %p2231_p3 = pnand %p2230_p4, %p2224_p9 }
  0x59   : > { %2234 = shalt.err (!%p2231_p3)
}
  0x5a   : > { %1729 = dma.hbm_to_vmem [thread:$0]  (!%p2435_p11), %s2476_s14, 2048, %s2480_s20, %s200_s5, %s2313_s30, %s2313_s30, %s2314_s6  }
  0x5b   : > { %222 = sbr.rel (%p2384_p8) target bundleno = 535 (0x217), region = 36  ;;  %s2510_s0 = sand.u32 (!%p2384_p8), 1, %s2299_s16  }
  0x5c   : > { %s1566_s24 = sshll.u32 (!%p2384_p8), %s2510_s0, 7  ;;  %s225_s26 = scalar_lea.sflag (!%p2384_p8), [#allocation3], %s2510_s0 }
  0x5d   : > { %s2514_s12 = scalar_lea.vmem (!%p2384_p8), [#allocation2], %s1566_s24  ;;  %p2803_p7 = scmp.ne.s32.totalorder (!%p2384_p8), %s2795_s21, 0 }
  0x60   : > { %2278 = dma.done.wait (%p2803_p7), %s225_s26, 2048  }
  0x61   : > { %2280 = vsyncadd (%p2803_p7), %s225_s26, 4294965248  ;;  %s233_s28 = sand.u32 1, %s2365_s19   ;;  %s2521_s30 = scalar_lea.vmem [#allocation5], %s1566_s24 }
  0x62   : > { %s234_s23 = scalar_lea.sflag [#allocation6], %s233_s28 }
  0x63   : > { %2282 = dma.done.wait (%p2803_p7), %s234_s23, 2048  }
  0x64   : > { %2284 = vsyncadd (%p2803_p7), %s234_s23, 4294965248  ;;  %p2804_p8 = scmp.eq.s32.totalorder %s2365_s19, 0 }
  0x66   : > { %2286 = dma.done.wait (%p2804_p8), [#allocation6], 8192   ;;  %p2805_p11 = pmov %p2804_p8 }
  0x67   : > { %v1777_v0 = vld [vmem:[#allocation7 + $0xe4] ss:$16 sps:$4 sm:$0xff]   ;;  %v1779_v1 = vld [vmem:[#allocation7 + $0xe0] ss:$16 sps:$4 sm:$0xff]   ;;  %v1788_v5 = vld [vmem:[#allocation7 + $0xec] ss:$16 sps:$4 sm:$0xff]  }
  0x68   : > { %2288 = vsyncadd (%p2805_p11), [#allocation6], 4294959104  ;;  %776 = vmatprep.subr.bf16.mxu0 %v1777_v0  ;;  %v1780_v2 = vld [vmem:[#allocation7 + $0xc4] ss:$16 sps:$4 sm:$0xff]   ;;  %v1782_v3 = vld [vmem:[#allocation7 + $0xc0] ss:$16 sps:$4 sm:$0xff]   ;;  %889 = vmatprep.subr.bf16.mxu1 %v1788_v5 }
  0x69   : > { %777 = vmatpush1.bf16.msra.mxu0 %v1779_v1  ;;  %v1783_v4 = vld [vmem:[#allocation7 + $0xa4] ss:$16 sps:$4 sm:$0xff]   ;;  %v1791_v6 = vld [vmem:[#allocation7 + $0xe8] ss:$16 sps:$4 sm:$0xff]   ;;  %v1785_v7 = vld [vmem:[#allocation7 + $0xa0] ss:$16 sps:$4 sm:$0xff]  }
  0x6a   : > { %778 = vmatprep.subr.bf16.mxu0 %v1780_v2  ;;  %v1786_v8 = vld [vmem:[#allocation7 + $0x84] ss:$16 sps:$4 sm:$0xff]   ;;  %890 = vmatpush1.bf16.msra.mxu1 %v1791_v6  ;;  %v1794_v9 = vld [vmem:[#allocation7 + $0xcc] ss:$16 sps:$4 sm:$0xff]   ;;  %v1797_v10 = vld [vmem:[#allocation7 + $0xc8] ss:$16 sps:$4 sm:$0xff]  }
  0x6b   : > { %891 = vmatprep.subr.bf16.mxu1 %v1794_v9  ;;  %v1790_v11 = vld [vmem:[#allocation7 + $0x80] ss:$16 sps:$4 sm:$0xff]   ;;  %v1792_v12 = vld [vmem:[#allocation7 + $0x64] ss:$16 sps:$4 sm:$0xff]   ;;  %v1800_v13 = vld [vmem:[#allocation7 + $0xac] ss:$16 sps:$4 sm:$0xff]  }
  0x6c   : > { %v1803_v14 = vld [vmem:[#allocation7 + $0xa8] ss:$16 sps:$4 sm:$0xff]   ;;  %v1806_v15 = vld [vmem:[#allocation7 + $0x8c] ss:$16 sps:$4 sm:$0xff]   ;;  %v1796_v16 = vld [vmem:[#allocation7 + $0x60] ss:$16 sps:$4 sm:$0xff]  }
  0x6d   : > { %779 = vmatpush1.bf16.msra.mxu0 %v1782_v3  ;;  %v1798_v17 = vld [vmem:[#allocation7 + $0x44] ss:$16 sps:$4 sm:$0xff]   ;;  %v1809_v18 = vld [vmem:[#allocation7 + $0x88] ss:$16 sps:$4 sm:$0xff]   ;;  %v1812_v19 = vld [vmem:[#allocation7 + $0x6c] ss:$16 sps:$4 sm:$0xff]  }
  0x6e   : > { %780 = vmatprep.subr.bf16.mxu0 %v1783_v4  ;;  %892 = vmatpush1.bf16.msra.mxu1 %v1797_v10  ;;  %v1802_v20 = vld [vmem:[#allocation7 + $0x40] ss:$16 sps:$4 sm:$0xff]   ;;  %v1804_v21 = vld [vmem:[#allocation7 + $0x24] ss:$16 sps:$4 sm:$0xff]   ;;  %v1815_v22 = vld [vmem:[#allocation7 + $0x68] ss:$16 sps:$4 sm:$0xff]  }
  0x6f   : > { %893 = vmatprep.subr.bf16.mxu1 %v1800_v13  ;;  %v1818_v23 = vld [vmem:[#allocation7 + $0x4c] ss:$16 sps:$4 sm:$0xff]   ;;  %v1808_v24 = vld [vmem:[#allocation7 + $0x20] ss:$16 sps:$4 sm:$0xff]   ;;  %v1810_v25 = vld [vmem:[#allocation7 + $0x4] ss:$16 sps:$4 sm:$0xff]  }
  0x70   : > { %v1821_v26 = vld [vmem:[#allocation7 + $0x48] ss:$16 sps:$4 sm:$0xff]   ;;  %v1824_v27 = vld [vmem:[#allocation7 + $0x2c] ss:$16 sps:$4 sm:$0xff]   ;;  %v1814_v28 = vld [vmem:[#allocation7] ss:$16 sps:$4 sm:$0xff]  }
  0x71   : > { %781 = vmatpush1.bf16.msra.mxu0 %v1785_v7  ;;  %v1816_v29 = vld [vmem:[#allocation7 + $0x1e4] ss:$16 sps:$4 sm:$0xff]   ;;  %v1827_v30 = vld [vmem:[#allocation7 + $0x28] ss:$16 sps:$4 sm:$0xff]   ;;  %v1830_v31 = vld [vmem:[#allocation7 + $0xc] ss:$16 sps:$4 sm:$0xff]  }
  0x72   : > { %782 = vmatprep.subr.bf16.mxu0 %v1786_v8  ;;  %894 = vmatpush1.bf16.msra.mxu1 %v1803_v14  ;;  %v1820_v32 = vld [vmem:[#allocation7 + $0x1e0] ss:$16 sps:$4 sm:$0xff]   ;;  %v1822_v33 = vld [vmem:[#allocation7 + $0x1c4] ss:$16 sps:$4 sm:$0xff]   ;;  %v1833_v34 = vld [vmem:[#allocation7 + $0x8] ss:$16 sps:$4 sm:$0xff]  }
  0x73   : > { %895 = vmatprep.subr.bf16.mxu1 %v1806_v15  ;;  %v1836_v35 = vld [vmem:[#allocation7 + $0x1ec] ss:$16 sps:$4 sm:$0xff]   ;;  %v1826_v36 = vld [vmem:[#allocation7 + $0x1c0] ss:$16 sps:$4 sm:$0xff]   ;;  %v1828_v37 = vld [vmem:[#allocation7 + $0x1a4] ss:$16 sps:$4 sm:$0xff]  }
  0x74   : > { %v1839_v38 = vld [vmem:[#allocation7 + $0x1e8] ss:$16 sps:$4 sm:$0xff]   ;;  %v1842_v39 = vld [vmem:[#allocation7 + $0x1cc] ss:$16 sps:$4 sm:$0xff]   ;;  %v1832_v40 = vld [vmem:[#allocation7 + $0x1a0] ss:$16 sps:$4 sm:$0xff]  }
  0x75   : > { %783 = vmatpush1.bf16.msra.mxu0 %v1790_v11  ;;  %v1834_v41 = vld [vmem:[#allocation7 + $0x184] ss:$16 sps:$4 sm:$0xff]   ;;  %v1845_v43 = vld [vmem:[#allocation7 + $0x1c8] ss:$16 sps:$4 sm:$0xff]   ;;  %v1848_v44 = vld [vmem:[#allocation7 + $0x1ac] ss:$16 sps:$4 sm:$0xff]  }
  0x76   : > { %784 = vmatprep.subr.bf16.mxu0 %v1792_v12  ;;  %896 = vmatpush1.bf16.msra.mxu1 %v1809_v18  ;;  %v1866_v42 = vld [vmem:[%s2514_s12 + $0x4] ss:$8 sps:$4 sm:$0xff]   ;;  %v1838_v45 = vld [vmem:[#allocation7 + $0x180] ss:$16 sps:$4 sm:$0xff]   ;;  %v1851_v47 = vld [vmem:[#allocation7 + $0x1a8] ss:$16 sps:$4 sm:$0xff]  }
  0x77   : > { %897 = vmatprep.subr.bf16.mxu1 %v1812_v19  ;;  %808 = vmatprep.mubr.bf16.mxu0 %v1866_v42  ;;  %v1840_v46 = vld [vmem:[#allocation7 + $0x164] ss:$16 sps:$4 sm:$0xff]   ;;  %v1854_v48 = vld [vmem:[#allocation7 + $0x18c] ss:$16 sps:$4 sm:$0xff]   ;;  %v1844_v49 = vld [vmem:[#allocation7 + $0x160] ss:$16 sps:$4 sm:$0xff]  }
  0x78   : > { %921 = vmatprep.mubr.bf16.mxu1 %v1866_v42  ;;  %v1846_v50 = vld [vmem:[#allocation7 + $0x144] ss:$16 sps:$4 sm:$0xff]   ;;  %v1857_v51 = vld [vmem:[#allocation7 + $0x188] ss:$16 sps:$4 sm:$0xff]   ;;  %v1860_v52 = vld [vmem:[#allocation7 + $0x16c] ss:$16 sps:$4 sm:$0xff]  }
  0x79   : > { %785 = vmatpush1.bf16.msra.mxu0 %v1796_v16  ;;  %v1850_v53 = vld [vmem:[#allocation7 + $0x140] ss:$16 sps:$4 sm:$0xff]   ;;  %v1852_v54 = vld [vmem:[#allocation7 + $0x124] ss:$16 sps:$4 sm:$0xff]   ;;  %v1863_v55 = vld [vmem:[#allocation7 + $0x168] ss:$16 sps:$4 sm:$0xff]   ;;  %v356_v16 = vlaneseq }
  0x7a   : > { %786 = vmatprep.subr.bf16.mxu0 %v1798_v17  ;;  %898 = vmatpush1.bf16.msra.mxu1 %v1815_v22  ;;  %v1867_v56 = vld [vmem:[#allocation7 + $0x14c] ss:$16 sps:$4 sm:$0xff]   ;;  %v1856_v57 = vld [vmem:[#allocation7 + $0x120] ss:$16 sps:$4 sm:$0xff]   ;;  %v1858_v58 = vld [vmem:[#allocation7 + $0x104] ss:$16 sps:$4 sm:$0xff]  }
  0x7b   : > { %899 = vmatprep.subr.bf16.mxu1 %v1818_v23  ;;  %v1869_v59 = vld [vmem:[#allocation7 + $0x148] ss:$16 sps:$4 sm:$0xff]   ;;  %v1870_v60 = vld [vmem:[#allocation7 + $0x12c] ss:$16 sps:$4 sm:$0xff]   ;;  %v1862_v61 = vld [vmem:[#allocation7 + $0x100] ss:$16 sps:$4 sm:$0xff]  }
  0x7c   : > { %v1872_v62 = vld [vmem:[#allocation7 + $0x128] ss:$16 sps:$4 sm:$0xff]   ;;  %v1876_v63 = vld [vmem:[#allocation7 + $0x10c] ss:$16 sps:$4 sm:$0xff]   ;;  %v357_v17 = vshrl.u32 %v356_v16, 7  ;;  %s1569_s14 = sshll.u32 %s2510_s0, 8 }
  0x7d   : > { %787 = vmatpush1.bf16.msra.mxu0 %v1802_v20  ;;  %v1864_v0 = vld [vmem:[%s2514_s12] ss:$8 sps:$4 sm:$0xff]   ;;  %v1873_v1 = vld [vmem:[%s2514_s12 + $0x14] ss:$8 sps:$4 sm:$0xff]   ;;  %v1875_v3 = vld [vmem:[%s2514_s12 + $0x10] ss:$8 sps:$4 sm:$0xff]  }
  0x7e   : > { %788 = vmatprep.subr.bf16.mxu0 %v1804_v21  ;;  %900 = vmatpush1.bf16.msra.mxu1 %v1821_v26  ;;  %v1878_v2 = vld [vmem:[#allocation7 + $0x108] ss:$16 sps:$4 sm:$0xff]   ;;  %v1879_v4 = vld [vmem:[%s2514_s12 + $0x24] ss:$8 sps:$4 sm:$0xff]   ;;  %v1882_v6 = vld [vmem:[%s2514_s12 + $0x34] ss:$8 sps:$4 sm:$0xff]  }
  0x7f   : > { %901 = vmatprep.subr.bf16.mxu1 %v1824_v27  ;;  %v1881_v5 = vld [vmem:[%s2514_s12 + $0x20] ss:$8 sps:$4 sm:$0xff]   ;;  %v1884_v7 = vld [vmem:[%s2514_s12 + $0x30] ss:$8 sps:$4 sm:$0xff]   ;;  %v1885_v8 = vld [vmem:[%s2514_s12 + $0x44] ss:$8 sps:$4 sm:$0xff]  }
  0x80   : > { %v1887_v9 = vld [vmem:[%s2514_s12 + $0x40] ss:$8 sps:$4 sm:$0xff]   ;;  %v1888_v10 = vld [vmem:[%s2514_s12 + $0x54] ss:$8 sps:$4 sm:$0xff]   ;;  %v1890_v11 = vld [vmem:[%s2514_s12 + $0x50] ss:$8 sps:$4 sm:$0xff]  }
  0x81   : > { %789 = vmatpush1.bf16.msra.mxu0 %v1808_v24  ;;  %v1891_v12 = vld [vmem:[%s2514_s12 + $0x64] ss:$8 sps:$4 sm:$0xff]   ;;  %v1893_v13 = vld [vmem:[%s2514_s12 + $0x60] ss:$8 sps:$4 sm:$0xff]   ;;  %v1894_v14 = vld [vmem:[%s2514_s12 + $0x74] ss:$8 sps:$4 sm:$0xff]  }
  0x82   : > { %790 = vmatprep.subr.bf16.mxu0 %v1810_v25  ;;  %902 = vmatpush1.bf16.msra.mxu1 %v1827_v30  ;;  %v1896_v15 = vld [vmem:[%s2514_s12 + $0x70] ss:$8 sps:$4 sm:$0xff]   ;;  %v358_v18 = vsub.s32 0, %v357_v17  ;;  %v354_v19 = vld [vmem:[%s2789_s3] sm:$0xf]  ;;  %v362_v20 = vsub.s32 1, %v357_v17 }
  0x83   : > { %903 = vmatprep.subr.bf16.mxu1 %v1830_v31  ;;  %v366_v22 = vsub.s32 2, %v357_v17  ;;  %v370_v25 = vsub.s32 3, %v357_v17  ;;  %s2595_s20 = scalar_lea.vmem [#allocation8], %s1569_s14  ;;  %s1708_s5 = sshll.u32 %s2365_s19, 12 }
  0x84   : > { %v2550_v21 = vrot.slane %v354_v19, %v358_v18  ;;  %v2552_v23 = vrot.slane %v354_v19, %v362_v20  ;;  %s1449_s29 = sshll.u32 %s2595_s20, 4  ;;  %s2740_s8 = scalar_lea.hbm %s2790_s4, %s1708_s5  ;;  %s2742_s29 = int_to_ptr.vmem [resolvable:$true] %s1449_s29 }
  0x85   : > { %791 = vmatpush1.bf16.msra.mxu0 %v1814_v28  ;;  %v2555_v28 = vrot.slane %v354_v19, %v366_v22  ;;  %s1435_s11 = scalar_lea.sflag [#allocation4], %s2510_s0  ;;  %s2235_s25 = scalar_lea.vmem %s2742_s29, 4096 }
  0x86   : > { %792 = vmatprep.subr.bf16.mxu0 %v1816_v29  ;;  %904 = vmatpush1.bf16.msra.mxu1 %v1833_v34  ;;  %p2236_p6 = scmp.ne.s32.totalorder %s2742_s29, %s2235_s25  ;;  %p2806_p10 = scmp.ne.s32.totalorder %s2800_s10, 0 }
  0x87   : > { %905 = vmatprep.subr.bf16.mxu1 %v1836_v35  ;;  %s2316_s19 = smov [#allocation8]  }
  0x88   : > { %p2237_p12 = pnand %p2236_p6, %p2806_p10  ;;  %s2239_s24 = sshll.u32 %s2316_s19, 4  ;;  %s2240_s24 = int_to_ptr.vmem [resolvable:$false] %s2239_s24 }
  0x89   : > { %793 = vmatpush2.bf16.msra.mxu0 %v1820_v32  ;;  %v2558_v32 = vrot.slane %v354_v19, %v370_v25  ;;  %s2241_s26 = scalar_lea.vmem %s2240_s24, 8192  ;;  %p2242_p0 = scmp.lt.s32.totalorder %s2742_s29, %s2240_s24 }
  0x8a   : > { %794 = vmatprep.subr.bf16.mxu0 %v1822_v33  ;;  %906 = vmatpush2.bf16.msra.mxu1 %v1839_v38  ;;  %p2238_p13 = pneg %p2237_p12  ;;  %p2243_p5 = scmp.lt.s32.totalorder %s2241_s26, %s2235_s25 }
  0x8b   : > { %907 = vmatprep.subr.bf16.mxu1 %v1842_v39 }
  0x8c   : > { %p2244_p9 = por %p2243_p5, %p2242_p0 }
  0x8d   : > { %795 = vmatpush2.bf16.msra.mxu0 %v1826_v36 }
  0x8e   : > { %796 = vmatprep.subr.bf16.mxu0 %v1828_v37  ;;  %908 = vmatpush2.bf16.msra.mxu1 %v1845_v43  ;;  %p2245_p2 = pnand %p2244_p9, %p2238_p13 }
  0x8f   : > { %909 = vmatprep.subr.bf16.mxu1 %v1848_v44 }
  0x91   : > { %797 = vmatpush2.bf16.msra.mxu0 %v1832_v40 }
  0x92   : > { %798 = vmatprep.subr.bf16.mxu0 %v1834_v41  ;;  %910 = vmatpush2.bf16.msra.mxu1 %v1851_v47 }
  0x93   : > { %911 = vmatprep.subr.bf16.mxu1 %v1854_v48 }
  0x95   : > { %799 = vmatpush2.bf16.msra.mxu0 %v1838_v45 }
  0x96   : > { %800 = vmatprep.subr.bf16.mxu0 %v1840_v46  ;;  %912 = vmatpush2.bf16.msra.mxu1 %v1857_v51 }
  0x97   : > { %913 = vmatprep.subr.bf16.mxu1 %v1860_v52 }
  0x99   : > { %801 = vmatpush2.bf16.msra.mxu0 %v1844_v49 }
  0x9a   : > { %802 = vmatprep.subr.bf16.mxu0 %v1846_v50  ;;  %914 = vmatpush2.bf16.msra.mxu1 %v1863_v55 }
  0x9b   : > { %915 = vmatprep.subr.bf16.mxu1 %v1867_v56 }
  0x9d   : > { %803 = vmatpush2.bf16.msra.mxu0 %v1850_v53 }
  0x9e   : > { %804 = vmatprep.subr.bf16.mxu0 %v1852_v54  ;;  %916 = vmatpush2.bf16.msra.mxu1 %v1869_v59 }
  0x9f   : > { %917 = vmatprep.subr.bf16.mxu1 %v1870_v60 }
  0xa1   : > { %805 = vmatpush2.bf16.msra.mxu0 %v1856_v57 }
  0xa2   : > { %806 = vmatprep.subr.bf16.mxu0 %v1858_v58  ;;  %918 = vmatpush2.bf16.msra.mxu1 %v1872_v62 }
  0xa3   : > { %919 = vmatprep.subr.bf16.mxu1 %v1876_v63 }
  0xa5   : > { %807 = vmatpush2.bf16.msra.mxu0 %v1862_v61 }
  0xa6   : > { %920 = vmatpush2.bf16.msra.mxu1 %v1878_v2 }
  0xa8   : > { %809 = vmatmul.mubr.bf16.vlgmr.msra.gmra.mxu0 %v1864_v0 }
  0xa9   : > { %818 = vmatprep.mubr.bf16.mxu0 %v1873_v1  ;;  %922 = vmatmul.mubr.bf16.vlgmr.msra.gmra.mxu1 %v1864_v0 }
  0xaa   : > { %931 = vmatprep.mubr.bf16.mxu1 %v1873_v1 }
  0xb0   : > { %819 = vmatmul.mubr.bf16.gmra.mxu0 %v1875_v3 }
  0xb1   : > { %828 = vmatprep.mubr.bf16.mxu0 %v1879_v4  ;;  %932 = vmatmul.mubr.bf16.gmra.mxu1 %v1875_v3 }
  0xb2   : > { %941 = vmatprep.mubr.bf16.mxu1 %v1879_v4 }
  0xb8   : > { %829 = vmatmul.mubr.bf16.gmra.mxu0 %v1881_v5 }
  0xb9   : > { %838 = vmatprep.mubr.bf16.mxu0 %v1882_v6  ;;  %942 = vmatmul.mubr.bf16.gmra.mxu1 %v1881_v5 }
  0xba   : > { %951 = vmatprep.mubr.bf16.mxu1 %v1882_v6 }
  0xc0   : > { %839 = vmatmul.mubr.bf16.gmra.mxu0 %v1884_v7 }
  0xc1   : > { %848 = vmatprep.mubr.bf16.mxu0 %v1885_v8  ;;  %952 = vmatmul.mubr.bf16.gmra.mxu1 %v1884_v7 }
  0xc2   : > { %961 = vmatprep.mubr.bf16.mxu1 %v1885_v8 }
  0xc8   : > { %849 = vmatmul.mubr.bf16.gmra.mxu0 %v1887_v9 }
  0xc9   : > { %858 = vmatprep.mubr.bf16.mxu0 %v1888_v10  ;;  %962 = vmatmul.mubr.bf16.gmra.mxu1 %v1887_v9 }
  0xca   : > { %971 = vmatprep.mubr.bf16.mxu1 %v1888_v10 }
  0xd0   : > { %859 = vmatmul.mubr.bf16.gmra.mxu0 %v1890_v11 }
  0xd1   : > { %868 = vmatprep.mubr.bf16.mxu0 %v1891_v12  ;;  %972 = vmatmul.mubr.bf16.gmra.mxu1 %v1890_v11 }
  0xd2   : > { %981 = vmatprep.mubr.bf16.mxu1 %v1891_v12 }
  0xd8   : > { %869 = vmatmul.mubr.bf16.gmra.mxu0 %v1893_v13 }
  0xd9   : > { %878 = vmatprep.mubr.bf16.mxu0 %v1894_v14  ;;  %982 = vmatmul.mubr.bf16.gmra.mxu1 %v1893_v13 }
  0xda   : > { %991 = vmatprep.mubr.bf16.mxu1 %v1894_v14 }
  0xe0   : > { %879 = vmatmul.mubr.bf16.gmra.mxu0 %v1896_v15 }
  0xe1   : > { %992 = vmatmul.mubr.bf16.gmra.mxu1 %v1896_v15 }
 0x168   : > { %v810_v24 = vpop.f32.mrf.mxu0 }
 0x169   : > { %v811_v26 = vadd.f32 %v810_v24, %v2550_v21  ;;  %v923_v35 = vpop.f32.mrf.mxu1 }
 0x16a   : > { %v812_v27 = vpop.f32.mrf.mxu0  ;;  %v924_v37 = vadd.f32 %v923_v35, %v2555_v28 }
 0x16b   : > { %v1650_v29 = vmul.f32 -1.442695, %v811_v26  ;;  %v813_v30 = vadd.f32 %v812_v27, %v2552_v23  ;;  %v925_v40 = vpop.f32.mrf.mxu1 }
 0x16c   : > { %v814_v31 = vpop.f32.mrf.mxu0  ;;  %v1682_v42 = vmul.f32 -1.442695, %v924_v37  ;;  %v926_v43 = vadd.f32 %v925_v40, %v2558_v32 }
 0x16d   : > { %1897 = vpow2.f32 %v1650_v29  ;;  %v1666_v33 = vmul.f32 -1.442695, %v813_v30  ;;  %v815_v34 = vadd.f32 %v814_v31, %v2550_v21  ;;  %v927_v46 = vpop.f32.mrf.mxu1 }
 0x16e   : > { %v816_v36 = vpop.f32.mrf.mxu0  ;;  %v928_v48 = vadd.f32 %v927_v46, %v2555_v28 }
 0x16f   : > { %1899 = vpow2.f32 %v1666_v33  ;;  %v1651_v38 = vmul.f32 -1.442695, %v815_v34  ;;  %v817_v39 = vadd.f32 %v816_v36, %v2552_v23  ;;  %v929_v51 = vpop.f32.mrf.mxu1 }
 0x170   : > { %v820_v41 = vpop.f32.mrf.mxu0  ;;  %v1683_v53 = vmul.f32 -1.442695, %v928_v48  ;;  %v930_v54 = vadd.f32 %v929_v51, %v2558_v32 }
 0x171   : > { %1901 = vpow2.f32 %v1651_v38  ;;  %v1667_v44 = vmul.f32 -1.442695, %v817_v39  ;;  %v821_v45 = vadd.f32 %v820_v41, %v2550_v21  ;;  %v933_v57 = vpop.f32.mrf.mxu1 }
 0x172   : > { %v822_v47 = vpop.f32.mrf.mxu0  ;;  %1903 = vpow2.f32 %v1682_v42  ;;  %v934_v59 = vadd.f32 %v933_v57, %v2555_v28  ;;  %v1306_v57 = vld [vmem:[%s2521_s30] sm:$0xff] }
 0x173   : > { %1905 = vpow2.f32 %v1667_v44  ;;  %v1652_v49 = vmul.f32 -1.442695, %v821_v45  ;;  %v823_v50 = vadd.f32 %v822_v47, %v2552_v23  ;;  %v935_v62 = vpop.f32.mrf.mxu1 }
 0x174   : > { %v824_v52 = vpop.f32.mrf.mxu0  ;;  %1907 = vtanh.f32 %v926_v43  ;;  %v1684_v0 = vmul.f32 -1.442695, %v934_v59  ;;  %v936_v1 = vadd.f32 %v935_v62, %v2558_v32 }
 0x175   : > { %1909 = vpow2.f32 %v1652_v49  ;;  %v1668_v55 = vmul.f32 -1.442695, %v823_v50  ;;  %v825_v56 = vadd.f32 %v824_v52, %v2550_v21  ;;  %v937_v4 = vpop.f32.mrf.mxu1 }
 0x176   : > { %v826_v58 = vpop.f32.mrf.mxu0  ;;  %1911 = vpow2.f32 %v1683_v53  ;;  %v938_v42 = vadd.f32 %v937_v4, %v2555_v28 }
 0x177   : > { %1913 = vpow2.f32 %v1668_v55  ;;  %v1653_v60 = vmul.f32 -1.442695, %v825_v56  ;;  %v827_v61 = vadd.f32 %v826_v58, %v2552_v23  ;;  %v2575_v15 = vpop.f32.mrf.mxu1 }
 0x178   : > { %v830_v63 = vpop.f32.mrf.mxu0  ;;  %1915 = vtanh.f32 %v930_v54  ;;  %v1685_v54 = vmul.f32 -1.442695, %v938_v42 }
 0x179   : > { %1917 = vpow2.f32 %v1653_v60  ;;  %v1669_v2 = vmul.f32 -1.442695, %v827_v61  ;;  %v831_v3 = vadd.f32 %v830_v63, %v2550_v21  ;;  %v943_v30 = vpop.f32.mrf.mxu1 }
 0x17a   : > { %v1898_v5 = vpop.eup %1897  ;;  %v832_v6 = vpop.f32.mrf.mxu0  ;;  %1919 = vpow2.f32 %v1684_v0 }
 0x17b   : > { %v1050_v7 = vadd.f32 1.0, %v1898_v5  ;;  %1921 = vpow2.f32 %v1669_v2  ;;  %v1654_v8 = vmul.f32 -1.442695, %v831_v3  ;;  %v833_v9 = vadd.f32 %v832_v6, %v2552_v23  ;;  %v2580_v43 = vpop.f32.mrf.mxu1  ;;  %v1307_v6 = vld [vmem:[%s2521_s30 + $0x8] sm:$0xff] }
 0x17c   : > { %v1900_v10 = vpop.eup %1899  ;;  %v834_v11 = vpop.f32.mrf.mxu0  ;;  %1923 = vtanh.f32 %v936_v1 }
 0x17d   : > { %1925 = vrcp.f32 %v1050_v7  ;;  %v1146_v12 = vadd.f32 1.0, %v1900_v10  ;;  %v1670_v13 = vmul.f32 -1.442695, %v833_v9  ;;  %v835_v14 = vadd.f32 %v834_v11, %v2550_v21  ;;  %v947_v55 = vpop.f32.mrf.mxu1 }
 0x17e   : > { %v1902_v16 = vpop.eup %1901  ;;  %1927 = vpow2.f32 %v1654_v8  ;;  %v836_v17 = vpop.f32.mrf.mxu0  ;;  %v940_v7 = vadd.f32 %v2575_v15, %v2558_v32  ;;  %v944_v8 = vadd.f32 %v943_v30, %v2555_v28 }
 0x17f   : > { %v1904_v18 = vpop.eup %1903  ;;  %1929 = vrcp.f32 %v1146_v12  ;;  %v1051_v19 = vadd.f32 1.0, %v1902_v16  ;;  %v1655_v24 = vmul.f32 -1.442695, %v835_v14  ;;  %v837_v25 = vadd.f32 %v836_v17, %v2552_v23  ;;  %v2586_v3 = vpop.f32.mrf.mxu1 }
 0x180   : > { %v1906_v20 = vpop.eup %1905  ;;  %v1242_v22 = vadd.f32 1.0, %v1904_v18  ;;  %1931 = vpow2.f32 %v1670_v13  ;;  %v840_v26 = vpop.f32.mrf.mxu0 }
 0x181   : > { %v1908_v27 = vpop.eup %1907  ;;  %1933 = vrcp.f32 %v1051_v19  ;;  %v1147_v29 = vadd.f32 1.0, %v1906_v20  ;;  %v1671_v38 = vmul.f32 -1.442695, %v837_v25  ;;  %v841_v39 = vadd.f32 %v840_v26, %v2550_v21  ;;  %v953_v18 = vpop.f32.mrf.mxu1 }
 0x182   : > { %v1910_v31 = vpop.eup %1909  ;;  %1935 = vrcp.f32 %v1242_v22  ;;  %v842_v35 = vpop.f32.mrf.mxu0  ;;  %v1308_v22 = vld [vmem:[%s2521_s30 + $0x10] sm:$0xff] }
 0x183   : > { %v1912_v33 = vpop.eup %1911  ;;  %1937 = vrcp.f32 %v1147_v29  ;;  %v1052_v34 = vadd.f32 1.0, %v1910_v31  ;;  %v843_v47 = vadd.f32 %v842_v35, %v2552_v23  ;;  %v1656_v51 = vmul.f32 -1.442695, %v841_v39 }
 0x184   : > { %v1914_v36 = vpop.eup %1913  ;;  %v1243_v37 = vadd.f32 1.0, %v1912_v33  ;;  %1939 = vpow2.f32 %v1655_v24  ;;  %v844_v48 = vpop.f32.mrf.mxu0  ;;  %v1686_v24 = vmul.f32 -1.442695, %v944_v8  ;;  %v946_v39 = vadd.f32 %v2580_v43, %v2558_v32 }
 0x185   : > { %v1916_v40 = vpop.eup %1915  ;;  %1941 = vrcp.f32 %v1052_v34  ;;  %v1148_v41 = vadd.f32 1.0, %v1914_v36  ;;  %v1672_v59 = vmul.f32 -1.442695, %v843_v47  ;;  %v845_v60 = vadd.f32 %v844_v48, %v2550_v21  ;;  %v2603_v36 = vpop.f32.mrf.mxu1 }
 0x186   : > { %v1918_v44 = vpop.eup %1917  ;;  %1943 = vrcp.f32 %v1243_v37  ;;  %v846_v61 = vpop.f32.mrf.mxu0 }
 0x187   : > { %v1920_v45 = vpop.eup %1919  ;;  %1945 = vrcp.f32 %v1148_v41  ;;  %v1053_v46 = vadd.f32 1.0, %v1918_v44  ;;  %v1657_v11 = vmul.f32 -1.442695, %v845_v60  ;;  %v847_v12 = vadd.f32 %v846_v61, %v2552_v23 }
 0x188   : > { %v1922_v49 = vpop.eup %1921  ;;  %v1244_v50 = vadd.f32 1.0, %v1920_v45  ;;  %1947 = vpow2.f32 %v1671_v38  ;;  %v850_v13 = vpop.f32.mrf.mxu0  ;;  %v950_v61 = vadd.f32 %v2586_v3, %v2558_v32 }
 0x189   : > { %v1924_v52 = vpop.eup %1923  ;;  %1949 = vrcp.f32 %v1053_v46  ;;  %v1149_v53 = vadd.f32 1.0, %v1922_v49  ;;  %v851_v29 = vadd.f32 %v850_v13, %v2550_v21  ;;  %v957_v49 = vpop.f32.mrf.mxu1 }
 0x18a   : > { %v1926_v56 = vpop.eup %1925  ;;  %1951 = vrcp.f32 %v1244_v50  ;;  %v852_v30 = vpop.f32.mrf.mxu0 }
 0x18b   : > { %v1928_v58 = vpop.eup %1927  ;;  %1953 = vrcp.f32 %v1149_v53  ;;  %v1338_v2 = vmul.f32 %v1926_v56, %v1908_v27  ;;  %v1673_v27 = vmul.f32 -1.442695, %v847_v12  ;;  %v1658_v44 = vmul.f32 -1.442695, %v851_v29 }
 0x18c   : > { %v1930_v62 = vpop.eup %1929  ;;  %v1054_v63 = vadd.f32 1.0, %v1928_v58  ;;  %1955 = vpow2.f32 %v1656_v51  ;;  %v854_v45 = vpop.f32.mrf.mxu0  ;;  %v853_v47 = vadd.f32 %v852_v30, %v2552_v23  ;;  %v956_v29 = vadd.f32 %v2603_v36, %v2558_v32 }
 0x18d   : > { %v1932_v0 = vpop.eup %1931  ;;  %v1322_v1 = vmul.f32 %v1930_v62, %v1306_v57  ;;  %1957 = vpow2.f32 %v1685_v54  ;;  %v954_v62 = vadd.f32 %v953_v18, %v2555_v28  ;;  %v1310_v18 = vld [vmem:[%s2521_s30 + $0x20] sm:$0xff]  ;;  %v958_v30 = vadd.f32 %v957_v49, %v2555_v28  ;;  %v1311_v49 = vld [vmem:[%s2521_s30 + $0x28] sm:$0xff] }
 0x18e   : > { %v1934_v4 = vpop.eup %1933  ;;  %1959 = vrcp.f32 %v1054_v63  ;;  %v1150_v5 = vadd.f32 1.0, %v1932_v0  ;;  %v856_v56 = vpop.f32.mrf.mxu0  ;;  %v1674_v58 = vmul.f32 -1.442695, %v853_v47 }
 0x18f   : > { %v2592_v9 = vpop.eup %1935  ;;  %v1354_v10 = vadd.f32 %v1338_v2, %v1322_v1  ;;  %1961 = vpow2.f32 %v1672_v59  ;;  %v1339_v17 = vmul.f32 %v1934_v4, %v1916_v40  ;;  %v948_v40 = vadd.f32 %v947_v55, %v2555_v28  ;;  %v1309_v55 = vld [vmem:[%s2521_s30 + $0x18] sm:$0xff]  ;;  %v2619_v63 = vpop.f32.mrf.mxu1 }
 0x190   : > { %v1938_v14 = vpop.eup %1937  ;;  %1963 = vrcp.f32 %v1150_v5  ;;  %v857_v3 = vadd.f32 %v856_v56, %v2552_v23  ;;  %v1688_v12 = vmul.f32 -1.442695, %v954_v62  ;;  %v960_v56 = vadd.f32 %v2619_v63, %v2558_v32 }
 0x191   : > { %v1940_v16 = vpop.eup %1939  ;;  %1965 = vtanh.f32 %v1354_v10  ;;  %1403 = vst [vmem:[%s2595_s20 + $0x8] sm:$0xff] %v1354_v10  ;;  %v1323_v15 = vmul.f32 %v1938_v14, %v1307_v6  ;;  %v1687_v43 = vmul.f32 -1.442695, %v948_v40  ;;  %v860_v6 = vpop.f32.mrf.mxu0 }
 0x192   : > { %v1942_v19 = vpop.eup %1941  ;;  %v1055_v20 = vadd.f32 1.0, %v1940_v16  ;;  %1967 = vtanh.f32 %v940_v7  ;;  %v963_v13 = vpop.f32.mrf.mxu1 }
 0x193   : > { %v2599_v25 = vpop.eup %1943  ;;  %v1355_v26 = vadd.f32 %v1339_v17, %v1323_v15  ;;  %1969 = vpow2.f32 %v1657_v11  ;;  %v1340_v35 = vmul.f32 %v1942_v19, %v1924_v52  ;;  %v855_v52 = vadd.f32 %v854_v45, %v2550_v21  ;;  %v862_v19 = vpop.f32.mrf.mxu0 }
 0x194   : > { %v1946_v31 = vpop.eup %1945  ;;  %1971 = vrcp.f32 %v1055_v20  ;;  %v1689_v45 = vmul.f32 -1.442695, %v958_v30 }
 0x195   : > { %v1948_v33 = vpop.eup %1947  ;;  %1973 = vtanh.f32 %v1355_v26  ;;  %1405 = vst [vmem:[%s2595_s20 + $0x18] sm:$0xff] %v1355_v26  ;;  %v1324_v34 = vmul.f32 %v1946_v31, %v1308_v22  ;;  %v1659_v2 = vmul.f32 -1.442695, %v855_v52  ;;  %v2634_v31 = vpop.f32.mrf.mxu1 }
 0x196   : > { %v1950_v37 = vpop.eup %1949  ;;  %v1151_v38 = vadd.f32 1.0, %v1948_v33  ;;  %1975 = vpow2.f32 %v1686_v24  ;;  %v1675_v24 = vmul.f32 -1.442695, %v857_v3 }
 0x197   : > { %v2608_v41 = vpop.eup %1951  ;;  %v1356_v42 = vadd.f32 %v1340_v35, %v1324_v34  ;;  %1977 = vpow2.f32 %v1673_v27 }
 0x198   : > { %v1954_v46 = vpop.eup %1953  ;;  %1979 = vrcp.f32 %v1151_v38  ;;  %v863_v38 = vadd.f32 %v862_v19, %v2552_v23  ;;  %v966_v19 = vadd.f32 %v2634_v31, %v2558_v32 }
 0x199   : > { %v1956_v48 = vpop.eup %1955  ;;  %1981 = vtanh.f32 %v1356_v42  ;;  %1407 = vst [vmem:[%s2595_s20 + $0x28] sm:$0xff] %v1356_v42  ;;  %v1325_v1 = vmul.f32 %v1954_v46, %v1309_v55  ;;  %v967_v46 = vpop.f32.mrf.mxu1 }
 0x19a   : > { %v1958_v50 = vpop.eup %1957  ;;  %v1056_v51 = vadd.f32 1.0, %v1956_v48  ;;  %1983 = vtanh.f32 %v946_v39  ;;  %v864_v39 = vpop.f32.mrf.mxu0 }
 0x19b   : > { %v2613_v53 = vpop.eup %1959  ;;  %v1245_v54 = vadd.f32 1.0, %v1958_v50  ;;  %1985 = vpow2.f32 %v1658_v44  ;;  %v1676_v50 = vmul.f32 -1.442695, %v863_v38 }
 0x19c   : > { %v1962_v57 = vpop.eup %1961  ;;  %1987 = vrcp.f32 %v1056_v51  ;;  %v866_v51 = vpop.f32.mrf.mxu0 }
 0x19d   : > { %v1964_v59 = vpop.eup %1963  ;;  %1989 = vrcp.f32 %v1245_v54  ;;  %v1152_v60 = vadd.f32 1.0, %v1962_v57  ;;  %v2647_v57 = vpop.f32.mrf.mxu1 }
 0x19e   : > { %v1966_v0 = vpop.eup %1965  ;;  %1991 = vpow2.f32 %v1687_v43  ;;  %v1326_v33 = vmul.f32 %v1964_v59, %v1310_v18 }
 0x19f   : > { %v1968_v4 = vpop.eup %1967  ;;  %v1386_v5 = vmul.f32 %v1966_v0, %v2592_v9  ;;  %1993 = vrcp.f32 %v1152_v60  ;;  %v861_v9 = vadd.f32 %v860_v6, %v2550_v21  ;;  %v964_v60 = vadd.f32 %v963_v13, %v2555_v28 }
 0x1a0   : > { %v1970_v7 = vpop.eup %1969  ;;  %v1341_v8 = vmul.f32 %v1968_v4, %v1950_v37  ;;  %1995 = vpow2.f32 %v1674_v58  ;;  %v867_v0 = vadd.f32 %v866_v51, %v2552_v23 }
 0x1a1   : > { %v2623_v10 = vpop.eup %1971  ;;  %1402 = vst [vmem:[%s2595_s20] sm:$0xff] %v1386_v5  ;;  %v1057_v11 = vadd.f32 1.0, %v1970_v7  ;;  %1997 = vtanh.f32 %v950_v61  ;;  %v1660_v34 = vmul.f32 -1.442695, %v861_v9  ;;  %v973_v7 = vpop.f32.mrf.mxu1 }
 0x1a2   : > { %v1974_v14 = vpop.eup %1973  ;;  %v1357_v16 = vadd.f32 %v1341_v8, %v1325_v1  ;;  %1999 = vpow2.f32 %v1659_v2  ;;  %v870_v1 = vpop.f32.mrf.mxu0 }
 0x1a3   : > { %v1976_v15 = vpop.eup %1975  ;;  %v1387_v17 = vmul.f32 %v1974_v14, %v2599_v25  ;;  %2001 = vrcp.f32 %v1057_v11  ;;  %v1312_v11 = vld [vmem:[%s2521_s30 + $0x30] sm:$0xff]  ;;  %v1677_v14 = vmul.f32 -1.442695, %v867_v0 }
 0x1a4   : > { %v1978_v20 = vpop.eup %1977  ;;  %2003 = vtanh.f32 %v1357_v16  ;;  %1409 = vst [vmem:[%s2595_s20 + $0x38] sm:$0xff] %v1357_v16  ;;  %v1246_v22 = vadd.f32 1.0, %v1976_v15  ;;  %v872_v16 = vpop.f32.mrf.mxu0  ;;  %v871_v15 = vadd.f32 %v870_v1, %v2550_v21 }
 0x1a5   : > { %v1980_v26 = vpop.eup %1979  ;;  %1404 = vst [vmem:[%s2595_s20 + $0x10] sm:$0xff] %v1387_v17  ;;  %v1153_v27 = vadd.f32 1.0, %v1978_v20  ;;  %2005 = vpow2.f32 %v1688_v12  ;;  %v2660_v20 = vpop.f32.mrf.mxu1  ;;  %v873_v31 = vadd.f32 %v872_v16, %v2552_v23 }
 0x1a6   : > { %v1982_v25 = vpop.eup %1981  ;;  %2007 = vrcp.f32 %v1246_v22  ;;  %v1327_v55 = vmul.f32 %v1980_v26, %v1311_v49  ;;  %v968_v26 = vadd.f32 %v967_v46, %v2555_v28  ;;  %v874_v30 = vpop.f32.mrf.mxu0 }
 0x1a7   : > { %v1984_v35 = vpop.eup %1983  ;;  %v1388_v37 = vmul.f32 %v1982_v25, %v2608_v41  ;;  %2009 = vrcp.f32 %v1153_v27  ;;  %v977_v38 = vpop.f32.mrf.mxu1  ;;  %v1678_v49 = vmul.f32 -1.442695, %v873_v31 }
 0x1a8   : > { %v1986_v40 = vpop.eup %1985  ;;  %v1342_v36 = vmul.f32 %v1984_v35, %v2613_v53  ;;  %2011 = vpow2.f32 %v1675_v24  ;;  %v865_v53 = vadd.f32 %v864_v39, %v2550_v21 }
 0x1a9   : > { %v2639_v42 = vpop.eup %1987  ;;  %1406 = vst [vmem:[%s2595_s20 + $0x20] sm:$0xff] %v1388_v37  ;;  %v1058_v44 = vadd.f32 1.0, %v1986_v40  ;;  %2013 = vtanh.f32 %v956_v29 }
 0x1aa   : > { %v1990_v47 = vpop.eup %1989  ;;  %v1358_v48 = vadd.f32 %v1342_v36, %v1326_v33  ;;  %2015 = vpow2.f32 %v1660_v34  ;;  %v1661_v4 = vmul.f32 -1.442695, %v865_v53  ;;  %v1662_v34 = vmul.f32 -1.442695, %v871_v15  ;;  %v1313_v36 = vld [vmem:[%s2521_s30 + $0x38] sm:$0xff]  ;;  %v2674_v53 = vpop.f32.mrf.mxu1 }
 0x1ab   : > { %v1992_v41 = vpop.eup %1991  ;;  %2017 = vrcp.f32 %v1058_v44  ;;  %v875_v44 = vadd.f32 %v874_v30, %v2550_v21 }
 0x1ac   : > { %v1994_v43 = vpop.eup %1993  ;;  %2019 = vtanh.f32 %v1358_v48  ;;  %1411 = vst [vmem:[%s2595_s20 + $0x48] sm:$0xff] %v1358_v48  ;;  %v1247_v52 = vadd.f32 1.0, %v1992_v41  ;;  %v970_v41 = vadd.f32 %v2647_v57, %v2558_v32 }
 0x1ad   : > { %v1996_v54 = vpop.eup %1995  ;;  %2021 = vpow2.f32 %v1689_v45  ;;  %v1328_v18 = vmul.f32 %v1994_v43, %v1312_v11 }
 0x1ae   : > { %v1998_v58 = vpop.eup %1997  ;;  %2023 = vrcp.f32 %v1247_v52  ;;  %v1154_v59 = vadd.f32 1.0, %v1996_v54  ;;  %v974_v52 = vadd.f32 %v973_v7, %v2555_v28 }
 0x1af   : > { %v2000_v61 = vpop.eup %1999  ;;  %v1343_v62 = vmul.f32 %v1998_v58, %v2623_v10  ;;  %2025 = vpow2.f32 %v1676_v50  ;;  %v1690_v10 = vmul.f32 -1.442695, %v964_v60 }
 0x1b0   : > { %v2652_v2 = vpop.eup %2001  ;;  %2027 = vrcp.f32 %v1154_v59  ;;  %v1059_v63 = vadd.f32 1.0, %v2000_v61  ;;  %v1692_v1 = vmul.f32 -1.442695, %v974_v52 }
 0x1b1   : > { %v2004_v5 = vpop.eup %2003  ;;  %v1359_v6 = vadd.f32 %v1343_v62, %v1327_v55  ;;  %2029 = vtanh.f32 %v960_v56  ;;  %v1663_v55 = vmul.f32 -1.442695, %v875_v44 }
 0x1b2   : > { %v2006_v8 = vpop.eup %2005  ;;  %v1389_v3 = vmul.f32 %v2004_v5, %v1990_v47  ;;  %2031 = vrcp.f32 %v1059_v63  ;;  %v876_v47 = vpop.f32.mrf.mxu0 }
 0x1b3   : > { %v2008_v12 = vpop.eup %2007  ;;  %2033 = vtanh.f32 %v1359_v6  ;;  %1413 = vst [vmem:[%s2595_s20 + $0x58] sm:$0xff] %v1359_v6  ;;  %v1248_v13 = vadd.f32 1.0, %v2006_v8  ;;  %v877_v60 = vadd.f32 %v876_v47, %v2552_v23  ;;  %v983_v63 = vpop.f32.mrf.mxu1  ;;  %v1314_v6 = vld [vmem:[%s2521_s30 + $0x40] sm:$0xff] }
 0x1b4   : > { %v2010_v9 = vpop.eup %2009  ;;  %1408 = vst [vmem:[%s2595_s20 + $0x30] sm:$0xff] %v1389_v3  ;;  %2035 = vpow2.f32 %v1661_v4  ;;  %v880_v59 = vpop.f32.mrf.mxu0 }
 0x1b5   : > { %v2012_v17 = vpop.eup %2011  ;;  %2037 = vrcp.f32 %v1248_v13  ;;  %v1329_v43 = vmul.f32 %v2010_v9, %v1313_v36  ;;  %v881_v7 = vadd.f32 %v880_v59, %v2550_v21  ;;  %v1679_v11 = vmul.f32 -1.442695, %v877_v60  ;;  %v2687_v15 = vpop.f32.mrf.mxu1  ;;  %v1316_v60 = vld [vmem:[%s2521_s30 + $0x50] sm:$0xff] }
 0x1b6   : > { %v2014_v22 = vpop.eup %2013  ;;  %v1155_v24 = vadd.f32 1.0, %v2012_v17  ;;  %2039 = vpow2.f32 %v1690_v10  ;;  %v976_v10 = vadd.f32 %v2660_v20, %v2558_v32  ;;  %v978_v9 = vadd.f32 %v977_v38, %v2555_v28 }
 0x1b7   : > { %v2016_v27 = vpop.eup %2015  ;;  %v1344_v29 = vmul.f32 %v2014_v22, %v2639_v42  ;;  %2041 = vpow2.f32 %v1677_v14  ;;  %v1691_v42 = vmul.f32 -1.442695, %v968_v26 }
 0x1b8   : > { %v2664_v25 = vpop.eup %2017  ;;  %2043 = vrcp.f32 %v1155_v24  ;;  %v1060_v33 = vadd.f32 1.0, %v2016_v27 }
 0x1b9   : > { %v2020_v35 = vpop.eup %2019  ;;  %v1360_v37 = vadd.f32 %v1344_v29, %v1328_v18  ;;  %2045 = vtanh.f32 %v966_v19  ;;  %v1664_v18 = vmul.f32 -1.442695, %v881_v7 }
 0x1ba   : > { %v2022_v39 = vpop.eup %2021  ;;  %v1390_v40 = vmul.f32 %v2020_v35, %v2008_v12  ;;  %2047 = vrcp.f32 %v1060_v33  ;;  %v882_v12 = vpop.f32.mrf.mxu0  ;;  %v1693_v33 = vmul.f32 -1.442695, %v978_v9 }
 0x1bb   : > { %v2024_v45 = vpop.eup %2023  ;;  %2049 = vtanh.f32 %v1360_v37  ;;  %1415 = vst [vmem:[%s2595_s20 + $0x68] sm:$0xff] %v1360_v37  ;;  %v1249_v46 = vadd.f32 1.0, %v2022_v39  ;;  %v883_v20 = vadd.f32 %v882_v12, %v2552_v23  ;;  %v1315_v37 = vld [vmem:[%s2521_s30 + $0x48] sm:$0xff] }
 0x1bc   : > { %v2026_v48 = vpop.eup %2025  ;;  %1410 = vst [vmem:[%s2595_s20 + $0x40] sm:$0xff] %v1390_v40  ;;  %2051 = vpow2.f32 %v1662_v34  ;;  %v884_v26 = vpop.f32.mrf.mxu0 }
 0x1bd   : > { %v2028_v50 = vpop.eup %2027  ;;  %2053 = vrcp.f32 %v1249_v46  ;;  %v1156_v51 = vadd.f32 1.0, %v2026_v48  ;;  %v987_v34 = vpop.f32.mrf.mxu1  ;;  %v885_v36 = vadd.f32 %v884_v26, %v2550_v21  ;;  %v980_v46 = vadd.f32 %v2674_v53, %v2558_v32 }
 0x1be   : > { %v2030_v54 = vpop.eup %2029  ;;  %2055 = vpow2.f32 %v1691_v42  ;;  %v1330_v16 = vmul.f32 %v2028_v50, %v1314_v6  ;;  %v886_v42 = vpop.f32.mrf.mxu0 }
 0x1bf   : > { %v2676_v56 = vpop.eup %2031  ;;  %2057 = vrcp.f32 %v1156_v51  ;;  %v1345_v58 = vmul.f32 %v2030_v54, %v2652_v2  ;;  %v989_v47 = vpop.f32.mrf.mxu1  ;;  %v887_v21 = vadd.f32 %v886_v42, %v2552_v23  ;;  %v1665_v54 = vmul.f32 -1.442695, %v885_v36 }
 0x1c0   : > { %v2034_v57 = vpop.eup %2033  ;;  %2059 = vpow2.f32 %v1678_v49 }
 0x1c1   : > { %v2036_v61 = vpop.eup %2035  ;;  %v1391_v62 = vmul.f32 %v2034_v57, %v2024_v45  ;;  %v1361_v0 = vadd.f32 %v1345_v58, %v1329_v43  ;;  %2061 = vtanh.f32 %v970_v41  ;;  %v984_v41 = vadd.f32 %v983_v63, %v2555_v28  ;;  %v993_v59 = vpop.f32.mrf.mxu1 }
 0x1c2   : > { %v2038_v4 = vpop.eup %2037  ;;  %v1061_v5 = vadd.f32 1.0, %v2036_v61  ;;  %2063 = vpow2.f32 %v1663_v55 }
 0x1c3   : > { %v2040_v2 = vpop.eup %2039  ;;  %1412 = vst [vmem:[%s2595_s20 + $0x50] sm:$0xff] %v1391_v62  ;;  %2065 = vtanh.f32 %v1361_v0  ;;  %1417 = vst [vmem:[%s2595_s20 + $0x78] sm:$0xff] %v1361_v0  ;;  %v1694_v61 = vmul.f32 -1.442695, %v984_v41  ;;  %v1681_v62 = vmul.f32 -1.442695, %v887_v21  ;;  %v995_v6 = vpop.f32.mrf.mxu1 }
 0x1c4   : > { %v2042_v8 = vpop.eup %2041  ;;  %2067 = vrcp.f32 %v1061_v5  ;;  %v1250_v3 = vadd.f32 1.0, %v2040_v2  ;;  %v986_v5 = vadd.f32 %v2687_v15, %v2558_v32 }
 0x1c5   : > { %v2044_v13 = vpop.eup %2043  ;;  %v1157_v14 = vadd.f32 1.0, %v2042_v8  ;;  %2069 = vpow2.f32 %v1692_v1  ;;  %v988_v1 = vadd.f32 %v987_v34, %v2555_v28  ;;  %v997_v15 = vpop.f32.mrf.mxu1  ;;  %v996_v34 = vadd.f32 %v995_v6, %v2558_v32 }
 0x1c6   : > { %v2046_v17 = vpop.eup %2045  ;;  %2071 = vrcp.f32 %v1250_v3  ;;  %v1331_v45 = vmul.f32 %v2044_v13, %v1315_v37  ;;  %v994_v13 = vadd.f32 %v993_v59, %v2555_v28 }
 0x1c7   : > { %v2689_v19 = vpop.eup %2047  ;;  %2073 = vrcp.f32 %v1157_v14  ;;  %v1346_v22 = vmul.f32 %v2046_v17, %v2664_v25  ;;  %v1680_v25 = vmul.f32 -1.442695, %v883_v20  ;;  %v1695_v12 = vmul.f32 -1.442695, %v988_v1  ;;  %v999_v37 = vpop.f32.mrf.mxu1 }
 0x1c8   : > { %v2050_v24 = vpop.eup %2049  ;;  %2075 = vpow2.f32 %v1679_v11  ;;  %v1000_v42 = vadd.f32 %v999_v37, %v2558_v32 }
 0x1c9   : > { %v2052_v27 = vpop.eup %2051  ;;  %v1392_v29 = vmul.f32 %v2050_v24, %v2038_v4  ;;  %v1362_v30 = vadd.f32 %v1346_v22, %v1330_v16  ;;  %2077 = vtanh.f32 %v976_v10  ;;  %v990_v22 = vadd.f32 %v989_v47, %v2558_v32 }
 0x1ca   : > { %v2054_v31 = vpop.eup %2053  ;;  %v1062_v35 = vadd.f32 1.0, %v2052_v27  ;;  %2079 = vpow2.f32 %v1664_v18  ;;  %v1317_v18 = vld [vmem:[%s2521_s30 + $0x58] sm:$0xff]  ;;  %v1696_v27 = vmul.f32 -1.442695, %v994_v13 }
 0x1cb   : > { %v2056_v38 = vpop.eup %2055  ;;  %1414 = vst [vmem:[%s2595_s20 + $0x60] sm:$0xff] %v1392_v29  ;;  %2081 = vtanh.f32 %v1362_v30  ;;  %1419 = vst [vmem:[%s2595_s20 + $0x88] sm:$0xff] %v1362_v30 }
 0x1cc   : > { %v2058_v39 = vpop.eup %2057  ;;  %2083 = vrcp.f32 %v1062_v35  ;;  %v1251_v40 = vadd.f32 1.0, %v2056_v38 }
 0x1cd   : > { %v2060_v44 = vpop.eup %2059  ;;  %2085 = vpow2.f32 %v1693_v33  ;;  %v1332_v4 = vmul.f32 %v2058_v39, %v1316_v60  ;;  %v1320_v60 = vld [vmem:[%s2521_s30 + $0x70] sm:$0xff] }
 0x1ce   : > { %v2062_v48 = vpop.eup %2061  ;;  %2087 = vrcp.f32 %v1251_v40  ;;  %v1158_v49 = vadd.f32 1.0, %v2060_v44 }
 0x1cf   : > { %v2064_v50 = vpop.eup %2063  ;;  %v1347_v51 = vmul.f32 %v2062_v48, %v2676_v56  ;;  %2089 = vpow2.f32 %v1680_v25 }
 0x1d0   : > { %v2066_v43 = vpop.eup %2065  ;;  %2091 = vrcp.f32 %v1158_v49  ;;  %v1063_v52 = vadd.f32 1.0, %v2064_v50 }
 0x1d1   : > { %v2702_v53 = vpop.eup %2067  ;;  %v1393_v55 = vmul.f32 %v2066_v43, %v2054_v31  ;;  %v1363_v58 = vadd.f32 %v1347_v51, %v1331_v45  ;;  %2093 = vtanh.f32 %v980_v46  ;;  %v1318_v46 = vld [vmem:[%s2521_s30 + $0x60] sm:$0xff] }
 0x1d2   : > { %v2070_v57 = vpop.eup %2069  ;;  %2095 = vrcp.f32 %v1063_v52  ;;  %v1319_v52 = vld [vmem:[%s2521_s30 + $0x68] sm:$0xff] }
 0x1d3   : > { %v2072_v56 = vpop.eup %2071  ;;  %1416 = vst [vmem:[%s2595_s20 + $0x70] sm:$0xff] %v1393_v55  ;;  %2097 = vtanh.f32 %v1363_v58  ;;  %1421 = vst [vmem:[%s2595_s20 + $0x98] sm:$0xff] %v1363_v58  ;;  %v1252_v23 = vadd.f32 1.0, %v2070_v57 }
 0x1d4   : > { %v2074_v0 = vpop.eup %2073  ;;  %2099 = vpow2.f32 %v1665_v54 }
 0x1d5   : > { %v2076_v63 = vpop.eup %2075  ;;  %2101 = vrcp.f32 %v1252_v23  ;;  %v1333_v33 = vmul.f32 %v2074_v0, %v1317_v18 }
 0x1d6   : > { %v2078_v7 = vpop.eup %2077  ;;  %v1159_v2 = vadd.f32 1.0, %v2076_v63  ;;  %2103 = vpow2.f32 %v1694_v61 }
 0x1d7   : > { %v2080_v8 = vpop.eup %2079  ;;  %v1348_v3 = vmul.f32 %v2078_v7, %v2689_v19  ;;  %2105 = vpow2.f32 %v1681_v62  ;;  %v998_v19 = vadd.f32 %v997_v15, %v2555_v28 }
 0x1d8   : > { %v2082_v11 = vpop.eup %2081  ;;  %2107 = vrcp.f32 %v1159_v2  ;;  %v1064_v10 = vadd.f32 1.0, %v2080_v8 }
 0x1d9   : > { %v2084_v14 = vpop.eup %2083  ;;  %v1394_v16 = vmul.f32 %v2082_v11, %v2072_v56  ;;  %v1364_v9 = vadd.f32 %v1348_v3, %v1332_v4  ;;  %2109 = vtanh.f32 %v986_v5  ;;  %v1697_v35 = vmul.f32 -1.442695, %v998_v19 }
 0x1da   : > { %v2086_v17 = vpop.eup %2085  ;;  %2111 = vrcp.f32 %v1064_v10 }
 0x1db   : > { %v2088_v20 = vpop.eup %2087  ;;  %1418 = vst [vmem:[%s2595_s20 + $0x80] sm:$0xff] %v1394_v16  ;;  %2113 = vtanh.f32 %v1364_v9  ;;  %1423 = vst [vmem:[%s2595_s20 + $0xa8] sm:$0xff] %v1364_v9  ;;  %v1253_v24 = vadd.f32 1.0, %v2086_v17 }
 0x1dc   : > { %v2090_v26 = vpop.eup %2089  ;;  %2115 = vpow2.f32 %v1695_v12  ;;  %v1321_v12 = vld [vmem:[%s2521_s30 + $0x78] sm:$0xff] }
 0x1dd   : > { %v2092_v29 = vpop.eup %2091  ;;  %2117 = vrcp.f32 %v1253_v24  ;;  %v1160_v30 = vadd.f32 1.0, %v2090_v26 }
 0x1de   : > { %v2094_v31 = vpop.eup %2093  ;;  %2119 = vtanh.f32 %v990_v22  ;;  %v1334_v50 = vmul.f32 %v2092_v29, %v1318_v46 }
 0x1df   : > { %v2096_v28 = vpop.eup %2095  ;;  %2121 = vrcp.f32 %v1160_v30  ;;  %v1349_v38 = vmul.f32 %v2094_v31, %v2702_v53 }
 0x1e0   : > { %v2098_v25 = vpop.eup %2097  ;;  %2123 = vpow2.f32 %v1696_v27 }
 0x1e1   : > { %v2100_v39 = vpop.eup %2099  ;;  %v1395_v40 = vmul.f32 %v2098_v25, %v2088_v20  ;;  %v1365_v36 = vadd.f32 %v1349_v38, %v1333_v33  ;;  %2125 = vtanh.f32 %v996_v34 }
 0x1e2   : > { %v2102_v44 = vpop.eup %2101  ;;  %v1065_v45 = vadd.f32 1.0, %v2100_v39  ;;  %2127 = vpow2.f32 %v1697_v35 }
 0x1e3   : > { %v2104_v47 = vpop.eup %2103  ;;  %1420 = vst [vmem:[%s2595_s20 + $0x90] sm:$0xff] %v1395_v40  ;;  %2129 = vtanh.f32 %v1365_v36  ;;  %1425 = vst [vmem:[%s2595_s20 + $0xb8] sm:$0xff] %v1365_v36 }
 0x1e4   : > { %v2106_v48 = vpop.eup %2105  ;;  %2131 = vrcp.f32 %v1065_v45  ;;  %v1254_v21 = vadd.f32 1.0, %v2104_v47 }
 0x1e5   : > { %v2108_v49 = vpop.eup %2107  ;;  %v1161_v41 = vadd.f32 1.0, %v2106_v48  ;;  %2133 = vtanh.f32 %v1000_v42 }
 0x1e6   : > { %v2110_v51 = vpop.eup %2109  ;;  %v1335_v57 = vmul.f32 %v2108_v49, %v1319_v52 }
 0x1e7   : > { %v2112_v32 = vpop.eup %2111  ;;  %2135 = vrcp.f32 %v1161_v41  ;;  %v1350_v43 = vmul.f32 %v2110_v51, %v2084_v14 }
 0x1e8   : > { %v2114_v54 = vpop.eup %2113  ;;  %2137 = vrcp.f32 %v1254_v21 }
 0x1e9   : > { %v2116_v53 = vpop.eup %2115  ;;  %v1396_v55 = vmul.f32 %v2114_v54, %v2102_v44  ;;  %v1366_v58 = vadd.f32 %v1350_v43, %v1334_v50 }
 0x1ea   : > { %v2118_v59 = vpop.eup %2117  ;;  %v1255_v56 = vadd.f32 1.0, %v2116_v53 }
 0x1eb   : > { %v2120_v61 = vpop.eup %2119  ;;  %1422 = vst [vmem:[%s2595_s20 + $0xa0] sm:$0xff] %v1396_v55  ;;  %2139 = vtanh.f32 %v1366_v58  ;;  %1427 = vst [vmem:[%s2595_s20 + $0xc8] sm:$0xff] %v1366_v58 }
 0x1ec   : > { %v2122_v23 = vpop.eup %2121  ;;  %v1351_v62 = vmul.f32 %v2120_v61, %v2096_v28  ;;  %2141 = vrcp.f32 %v1255_v56 }
 0x1ed   : > { %v2124_v0 = vpop.eup %2123  ;;  %v1336_v1 = vmul.f32 %v2122_v23, %v1320_v60 }
 0x1ee   : > { %v2126_v63 = vpop.eup %2125  ;;  %v1367_v4 = vadd.f32 %v1351_v62, %v1335_v57  ;;  %v1256_v5 = vadd.f32 1.0, %v2124_v0 }
 0x1ef   : > { %v2128_v6 = vpop.eup %2127  ;;  %v1352_v7 = vmul.f32 %v2126_v63, %v2112_v32 }
 0x1f0   : > { %v2130_v2 = vpop.eup %2129  ;;  %2143 = vtanh.f32 %v1367_v4  ;;  %1429 = vst [vmem:[%s2595_s20 + $0xd8] sm:$0xff] %v1367_v4  ;;  %v1257_v16 = vadd.f32 1.0, %v2128_v6 }
 0x1f1   : > { %v2132_v8 = vpop.eup %2131  ;;  %v1397_v3 = vmul.f32 %v2130_v2, %v2118_v59  ;;  %v1368_v11 = vadd.f32 %v1352_v7, %v1336_v1  ;;  %2145 = vrcp.f32 %v1256_v5 }
 0x1f2   : > { %v2134_v10 = vpop.eup %2133 }
 0x1f3   : > { %1424 = vst [vmem:[%s2595_s20 + $0xb0] sm:$0xff] %v1397_v3  ;;  %2147 = vtanh.f32 %v1368_v11  ;;  %1431 = vst [vmem:[%s2595_s20 + $0xe8] sm:$0xff] %v1368_v11  ;;  %v1353_v13 = vmul.f32 %v2134_v10, %v2132_v8 }
 0x1f4   : > { %v2136_v14 = vpop.eup %2135  ;;  %2149 = vrcp.f32 %v1257_v16 }
 0x1f5   : > { %v1337_v9 = vmul.f32 %v2136_v14, %v1321_v12  ;;  %v2138_v15 = vpop.eup %2137 }
 0x1f7   : > { %v1369_v17 = vadd.f32 %v1353_v13, %v1337_v9 }
 0x1f8   : > { %v2140_v18 = vpop.eup %2139 }
 0x1f9   : > { %v1398_v22 = vmul.f32 %v2140_v18, %v2138_v15  ;;  %2151 = vtanh.f32 %v1369_v17  ;;  %1433 = vst [vmem:[%s2595_s20 + $0xf8] sm:$0xff] %v1369_v17  ;;  %v2142_v19 = vpop.eup %2141 }
 0x1fb   : > { %1426 = vst [vmem:[%s2595_s20 + $0xc0] sm:$0xff] %v1398_v22 }
 0x1fd   : > { %v2144_v20 = vpop.eup %2143 }
 0x1fe   : > { %v1399_v24 = vmul.f32 %v2144_v20, %v2142_v19  ;;  %v2146_v26 = vpop.eup %2145 }
 0x200   : > { %v2148_v27 = vpop.eup %2147  ;;  %1428 = vst [vmem:[%s2595_s20 + $0xd0] sm:$0xff] %v1399_v24 }
 0x201   : > { %v1400_v29 = vmul.f32 %v2148_v27, %v2146_v26  ;;  %v2150_v30 = vpop.eup %2149 }
 0x203   : > { %1430 = vst [vmem:[%s2595_s20 + $0xe0] sm:$0xff] %v1400_v29 }
 0x206   : > { %v2152_v33 = vpop.eup %2151 }
 0x207   : > { %v1401_v34 = vmul.f32 %v2152_v33, %v2150_v30 }
 0x209   : > { %1432 = vst [vmem:[%s2595_s20 + $0xf0] sm:$0xff] %v1401_v34 }
 0x20a   : > { %2248 = shalt.err (!%p2245_p2)
}
 0x20b   : > { %s2249_s12 = scalar_lea.hbm %s2740_s8, 4096  ;;  %s2253_s30 = scalar_lea.hbm %s2790_s4, 8192 }
 0x20c   : > { %p2250_p1 = scmp.ne.s32.totalorder %s2740_s8, %s2249_s12  ;;  %p2254_p7 = scmp.lt.s32.totalorder %s2740_s8, %s2790_s4 }
 0x20d   : > { %p2255_p8 = scmp.lt.s32.totalorder %s2253_s30, %s2249_s12 }
 0x20e   : > { %p2251_p4 = pnand %p2250_p1, %p2806_p10 }
 0x20f   : > { %p2256_p11 = por %p2255_p8, %p2254_p7 }
 0x210   : > { %p2252_p3 = pneg %p2251_p4 }
 0x212   : > { %p2257_p6 = pnand %p2256_p11, %p2252_p3 }
 0x214   : > { %2260 = shalt.err (!%p2257_p6)
}
 0x215   : > { %s2317_s14 = smov 256   ;;  %s2318_s20 = smov 16  }
 0x216   : > { %1717 = dma.vmem_to_hbm [thread:$0]  (%p2806_p10), %s2742_s29, 4096, %s2740_s8, %s1435_s11, %s2317_s14, %s2317_s14, %s2318_s20  }
 0x217 PF: > { %s1464_s5 = sand.u32 1, %s2295_s15   ;;  %p2807_p12 = scmp.ne.s32.totalorder %s2796_s22, 0 }
 0x218   : > { %p2808_p13 = scmp.ge.s32.totalorder %s2307_s18, 2  ;;  %s1465_s7 = scalar_lea.sflag [#allocation4], %s1464_s5 }
 0x21a   : > { %p1731_p0 = pnand %p2808_p13, %p2807_p12 }
 0x21c   : > { %p1732_p5 = pneg %p1731_p0 }
 0x21e   : > { %2290 = dma.done.wait (%p1732_p5), %s1465_s7, 4096  }
 0x21f   : > { %2292 = vsyncadd (%p1732_p5), %s1465_s7, 4294963200  ;;  %p20_p9 = scmp.ge.s32.totalorder %s2398_s27, 4   ;;  %s2809_s15 = smov %s2299_s16 }
 0x220   : > { %s2810_s16 = smov %s2303_s17  ;;  %s2811_s17 = smov %s2415_s9 }
 0x221   : > { %s2812_s18 = smov %s2398_s27  ;;  %22 = sbr.rel (!%p20_p9) target bundleno = 9 (0x9), region = 98 }
 0x226   :  { %1470 = vsyncpa [#allocation3], 1 }
 0x227   :  { %1472 = vsyncpa [#allocation3 + $0x1], 1 }
 0x228   :  { %1473 = vsyncpa [#allocation6], 1 }
 0x229   :  { %1475 = vsyncpa [#allocation6 + $0x1], 1 }
 0x22a   :  { %1476 = vsyncpa [#allocation4], 1 }
 0x22b   :  { %1478 = vsyncpa [#allocation4 + $0x1], 1 }

</bundles_post_ra>
